<compile_context>
chip_gen: v7x
topology: tpu7x:2x2x1
jax: 0.10.0
libtpu: 0.0.40
codegen_flags: <defaults>
</compile_context>

<pallas_src>
import jax
import jax.numpy as jnp
from jax.experimental import pallas as pl
from jax.experimental.pallas import tpu as pltpu

N_FEATURES = 32
H1 = 64
H2 = 32
OUTPUT_DIM = 8
BATCH = 16

PALLAS_MIN_BATCH = 256   # below this, XLA's fused path wins -> dispatch there
SPLIT_THRESHOLD = 1024   # below this, a single grid step covers the whole batch
MAX_TB = 2048            # max rows per tile once the batch is tiled


def _cdiv(a, b):
    return -(-a // b)


def _round_up(a, m):
    return _cdiv(a, m) * m


# --------------------------------------------------------------------------- #
# Kernel
# --------------------------------------------------------------------------- #
def generic_nn_kernel(x_ref, w1_ref, b1_ref, w2_ref, b2_ref, w3_ref, b3_ref, o_ref):
    def dense(a, w_ref, b_ref):
        # MXU matmul, f32 operands, f32 accumulation.
        return jnp.dot(a, w_ref[...], preferred_element_type=jnp.float32) + b_ref[...]

    # --- ("linear", 64) + ReLU ---
    h = jnp.maximum(dense(x_ref[...], w1_ref, b1_ref), 0.0)

    # --- ("dropout", 0.1) + ReLU ---
    # Eval-mode dropout is the identity; ReLU(ReLU(h)) == ReLU(h).
    # TODO(synk): training-mode inverted dropout would need pltpu.prng_seed /
    # pltpu.prng_random_bits to build the keep mask.

    # --- ("linear", 32) + ReLU ---
    h = jnp.maximum(dense(h, w2_ref, b2_ref), 0.0)

    # --- output nn.Linear(32, 8) ---
    logits = dense(h, w3_ref, b3_ref)

    # --- output_activation='softmax' (nn.Softmax(dim=-1)) ---
    m = jnp.max(logits, axis=-1, keepdims=True)
    e = jnp.exp(logits - m)
    # Exact divide: the VALU/EUP have huge slack here, so the approximate
    # reciprocal bought no wall-clock and cost ~1e-3 of accuracy.
    o_ref[...] = (e / jnp.sum(e, axis=-1, keepdims=True)).astype(o_ref.dtype)


# --------------------------------------------------------------------------- #
# Wrapper
# --------------------------------------------------------------------------- #
def _choose_batch_tiling(batch):
    """Pick (tile_rows, n_grid_steps) for the batch axis."""
    if batch < SPLIT_THRESHOLD:
        # One grid step; block dim == full array dim so any batch (even a
        # non-8-aligned one) is legal and needs no padding.
        return batch, 1
    # Balanced, 8-aligned tiles.  Force an EVEN step count so the "parallel"
    # batch axis splits evenly across v7x's two TensorCores (no-op on v5e/v6e).
    n_steps = max(2, _cdiv(batch, MAX_TB))
    if n_steps % 2:
        n_steps += 1
    tb = _round_up(_cdiv(batch, n_steps), 8)
    n_steps = _cdiv(batch, tb)
    return tb, n_steps


def _pallas_forward(x, params):
    w1, b1, w2, b2, w3, b3 = params
    batch = x.shape[0]
    tb, n_steps = _choose_batch_tiling(batch)

    # Weights/biases: constant-index full blocks -> DMA'd once, VMEM-resident.
    full = lambda shape: pl.BlockSpec(shape, lambda i: (0, 0))

    # No wrapper-side padding/slicing: if tb does not divide batch, the trailing
    # block's out-of-bounds rows are garbage on read (rows are independent, so
    # valid rows are unaffected) and dropped on write by the masked boundary DMA.
    return pl.pallas_call(
        generic_nn_kernel,
        out_shape=jax.ShapeDtypeStruct((batch, OUTPUT_DIM), jnp.float32),
        grid_spec=pltpu.PrefetchScalarGridSpec(
            num_scalar_prefetch=0,
            grid=(n_steps,),
            in_specs=[
                pl.BlockSpec((tb, N_FEATURES), lambda i: (i, 0)),  # x tile over batch
                full((N_FEATURES, H1)),
                full((1, H1)),
                full((H1, H2)),
                full((1, H2)),
                full((H2, OUTPUT_DIM)),
                full((1, OUTPUT_DIM)),
            ],
            out_specs=pl.BlockSpec((tb, OUTPUT_DIM), lambda i: (i, 0)),
        ),
        compiler_params=pltpu.CompilerParams(dimension_semantics=("parallel",)),
    )(x, w1, b1, w2, b2, w3, b3)


def generic_nn_forward(x, params, *, force_pallas=False):
    """Forward pass. Tiny batches dispatch to the XLA-fused reference path."""
    if not force_pallas and x.shape[0] < PALLAS_MIN_BATCH:
        return reference_forward(x, params)
    return _pallas_forward(x, params)


# --------------------------------------------------------------------------- #
# Parameters / reference
# --------------------------------------------------------------------------- #
def init_params(key):
    """Deterministic init mimicking torch.nn.Linear (U(-1/sqrt(fan_in), 1/sqrt(fan_in)))."""
    ks = jax.random.split(key, 6)

    def linear(kw, kb, fan_in, fan_out):
        bound = 1.0 / jnp.sqrt(fan_in)
        w = jax.random.uniform(kw, (fan_in, fan_out), jnp.float32, -bound, bound)
        b = jax.random.uniform(kb, (1, fan_out), jnp.float32, -bound, bound)
        return w, b

    w1, b1 = linear(ks[0], ks[1], N_FEATURES, H1)
    w2, b2 = linear(ks[2], ks[3], H1, H2)
    w3, b3 = linear(ks[4], ks[5], H2, OUTPUT_DIM)
    return (w1, b1, w2, b2, w3, b3)


@jax.jit
def reference_forward(x, params):
    """Pure-JAX reference (mirrors the PyTorch forward in eval mode), f32 matmuls."""
    w1, b1, w2, b2, w3, b3 = params
    hi = jax.lax.Precision.HIGHEST
    h = jnp.maximum(jnp.dot(x, w1, precision=hi) + b1, 0.0)   # linear + relu
    h = jnp.maximum(h, 0.0)                                   # dropout(identity) + relu
    h = jnp.maximum(jnp.dot(h, w2, precision=hi) + b2, 0.0)   # linear + relu
    logits = jnp.dot(h, w3, precision=hi) + b3                # output linear
    return jax.nn.softmax(logits, axis=-1)                    # softmax(dim=-1)


# --------------------------------------------------------------------------- #
# Self-test
# --------------------------------------------------------------------------- #
def _check(batch, key, params, *, force_pallas=True):
    kx = jax.random.fold_in(key, batch)
    x = jax.random.normal(kx, (batch, N_FEATURES), jnp.float32)
    out = jax.block_until_ready(generic_nn_forward(x, params, force_pallas=force_pallas))
    ref = reference_forward(x, params)
    assert out.shape == (batch, OUTPUT_DIM)
    assert jnp.allclose(out, ref, atol=1e-4, rtol=1e-4), (
        f"Pallas kernel mismatch vs JAX reference at batch={batch}")
    assert jnp.allclose(jnp.sum(out, axis=-1), 1.0, atol=1e-5), (
        f"softmax rows must sum to ~1 at batch={batch}")


if __name__ == "__main__":
    key = jax.random.PRNGKey(0)
    kx, kp = jax.random.split(key)
    params = init_params(kp)

    # Primary small shape, Pallas path forced: one grid step, no padding.
    _check(BATCH, kx, params, force_pallas=True)
    # Non-8-aligned small batch: single block covering the full batch dim.
    _check(20, kx, params, force_pallas=True)
    # Medium batch: still one grid step (tb == batch == 520).
    _check(520, kx, params, force_pallas=True)
    # Large divisible batch: even 2-step grid of 2048-row tiles (v7x TC sharding).
    _check(4096, kx, params)
    # Large ragged batch: balanced 1304-row tiles, partial trailing block handled
    # by Pallas's masked boundary DMA (no wrapper pad/slice).
    _check(2600, kx, params)
    # Default dispatch at tiny batch uses the XLA-fused fallback path.
    _check(BATCH, kx, params, force_pallas=False)

    print("KERNEL_OK")
</pallas_src>

<mosaic_0001>
module attributes {stable_mosaic.version = 11 : i64} {
  func.func @generic_nn_kernel(%arg0: i32, %arg1: memref<16x32xf32, #tpu.memory_space<vmem>>, %arg2: memref<32x64xf32, #tpu.memory_space<vmem>>, %arg3: memref<1x64xf32, #tpu.memory_space<vmem>>, %arg4: memref<64x32xf32, #tpu.memory_space<vmem>>, %arg5: memref<1x32xf32, #tpu.memory_space<vmem>>, %arg6: memref<32x8xf32, #tpu.memory_space<vmem>>, %arg7: memref<1x8xf32, #tpu.memory_space<vmem>>, %arg8: memref<16x8xf32, #tpu.memory_space<vmem>>) attributes {dimension_semantics = [#tpu.dimension_semantics<parallel>], iteration_bounds = array<i64: 1>, scalar_prefetch = 0 : i64, scratch_operands = 0 : i64, tpu.core_type = #tpu.core_type<tc>, window_params = [{transform_indices = @transform_0, window_bounds = array<i64: 16, 32>}, {pipeline_mode = #tpu.pipeline_mode<synchronous>, transform_indices = @transform_1, window_bounds = array<i64: 32, 64>}, {pipeline_mode = #tpu.pipeline_mode<synchronous>, transform_indices = @transform_2, window_bounds = array<i64: 1, 64>}, {pipeline_mode = #tpu.pipeline_mode<synchronous>, transform_indices = @transform_3, window_bounds = array<i64: 64, 32>}, {pipeline_mode = #tpu.pipeline_mode<synchronous>, transform_indices = @transform_4, window_bounds = array<i64: 1, 32>}, {pipeline_mode = #tpu.pipeline_mode<synchronous>, transform_indices = @transform_5, window_bounds = array<i64: 32, 8>}, {pipeline_mode = #tpu.pipeline_mode<synchronous>, transform_indices = @transform_6, window_bounds = array<i64: 1, 8>}, {transform_indices = @transform_7, window_bounds = array<i64: 16, 8>}]} {
    %c0 = arith.constant 0 : index
    %c0_0 = arith.constant 0 : index
    %0 = vector.load %arg1[%c0, %c0_0] : memref<16x32xf32, #tpu.memory_space<vmem>>, vector<16x32xf32>
    %c0_1 = arith.constant 0 : index
    %c0_2 = arith.constant 0 : index
    %1 = vector.load %arg2[%c0_1, %c0_2] : memref<32x64xf32, #tpu.memory_space<vmem>>, vector<32x64xf32>
    %cst = arith.constant dense<0.000000e+00> : vector<16x64xf32>
    %2 = tpu.matmul %0, %1, %cst {dimension_numbers = #tpu.dot_dimension_numbers<[1], [0], [0], [1], [0, 0, 1, 1], [], []>} : vector<16x32xf32>, vector<32x64xf32>, vector<16x64xf32> -> vector<16x64xf32>
    %c0_3 = arith.constant 0 : index
    %c0_4 = arith.constant 0 : index
    %3 = vector.load %arg3[%c0_3, %c0_4] : memref<1x64xf32, #tpu.memory_space<vmem>>, vector<1x64xf32>
    %4 = vector.broadcast %3 : vector<1x64xf32> to vector<16x64xf32>
    %5 = arith.addf %2, %4 : vector<16x64xf32>
    %cst_5 = arith.constant 0.000000e+00 : f32
    %6 = vector.broadcast %cst_5 : f32 to vector<16x64xf32>
    %7 = arith.maximumf %5, %6 : vector<16x64xf32>
    %c0_6 = arith.constant 0 : index
    %c0_7 = arith.constant 0 : index
    %8 = vector.load %arg4[%c0_6, %c0_7] : memref<64x32xf32, #tpu.memory_space<vmem>>, vector<64x32xf32>
    %cst_8 = arith.constant dense<0.000000e+00> : vector<16x32xf32>
    %9 = tpu.matmul %7, %8, %cst_8 {dimension_numbers = #tpu.dot_dimension_numbers<[1], [0], [0], [1], [0, 0, 1, 1], [], []>} : vector<16x64xf32>, vector<64x32xf32>, vector<16x32xf32> -> vector<16x32xf32>
    %c0_9 = arith.constant 0 : index
    %c0_10 = arith.constant 0 : index
    %10 = vector.load %arg5[%c0_9, %c0_10] : memref<1x32xf32, #tpu.memory_space<vmem>>, vector<1x32xf32>
    %11 = vector.broadcast %10 : vector<1x32xf32> to vector<16x32xf32>
    %12 = arith.addf %9, %11 : vector<16x32xf32>
    %cst_11 = arith.constant 0.000000e+00 : f32
    %13 = vector.broadcast %cst_11 : f32 to vector<16x32xf32>
    %14 = arith.maximumf %12, %13 : vector<16x32xf32>
    %c0_12 = arith.constant 0 : index
    %c0_13 = arith.constant 0 : index
    %15 = vector.load %arg6[%c0_12, %c0_13] : memref<32x8xf32, #tpu.memory_space<vmem>>, vector<32x8xf32>
    %cst_14 = arith.constant dense<0.000000e+00> : vector<16x8xf32>
    %16 = tpu.matmul %14, %15, %cst_14 {dimension_numbers = #tpu.dot_dimension_numbers<[1], [0], [0], [1], [0, 0, 1, 1], [], []>} : vector<16x32xf32>, vector<32x8xf32>, vector<16x8xf32> -> vector<16x8xf32>
    %c0_15 = arith.constant 0 : index
    %c0_16 = arith.constant 0 : index
    %17 = vector.load %arg7[%c0_15, %c0_16] : memref<1x8xf32, #tpu.memory_space<vmem>>, vector<1x8xf32>
    %18 = vector.broadcast %17 : vector<1x8xf32> to vector<16x8xf32>
    %19 = arith.addf %16, %18 : vector<16x8xf32>
    %cst_17 = arith.constant dense<0xFF800000> : vector<16xf32>
    %20 = vector.multi_reduction <maximumf>, %19, %cst_17 [1] : vector<16x8xf32> to vector<16xf32>
    %21 = vector.shape_cast %20 : vector<16xf32> to vector<16x1xf32>
    %22 = vector.broadcast %21 : vector<16x1xf32> to vector<16x8xf32>
    %23 = arith.subf %19, %22 : vector<16x8xf32>
    %24 = math.exp %23 : vector<16x8xf32>
    %cst_18 = arith.constant dense<0.000000e+00> : vector<16xf32>
    %25 = vector.multi_reduction <add>, %24, %cst_18 [1] : vector<16x8xf32> to vector<16xf32>
    %26 = vector.shape_cast %25 : vector<16xf32> to vector<16x1xf32>
    %27 = vector.broadcast %26 : vector<16x1xf32> to vector<16x8xf32>
    %28 = arith.divf %24, %27 : vector<16x8xf32>
    %c0_19 = arith.constant 0 : index
    %c0_20 = arith.constant 0 : index
    %29 = vector.load %arg8[%c0_19, %c0_20] : memref<16x8xf32, #tpu.memory_space<vmem>>, vector<16x8xf32>
    tpu.vector_store %arg8[%c0_19, %c0_20], %28 {strides = array<i32>} : memref<16x8xf32, #tpu.memory_space<vmem>>, vector<16x8xf32>,
    return
  }
  func.func @transform_0(%arg0: i32) -> (i32, i32) {
    %c0_i32 = arith.constant 0 : i32
    %c0_i32_0 = arith.constant 0 : i32
    return %arg0, %c0_i32 : i32, i32
  }
  func.func @transform_1(%arg0: i32) -> (i32, i32) {
    %c0_i32 = arith.constant 0 : i32
    %c0_i32_0 = arith.constant 0 : i32
    %c0_i32_1 = arith.constant 0 : i32
    return %c0_i32, %c0_i32_0 : i32, i32
  }
  func.func @transform_2(%arg0: i32) -> (i32, i32) {
    %c0_i32 = arith.constant 0 : i32
    %c0_i32_0 = arith.constant 0 : i32
    %c0_i32_1 = arith.constant 0 : i32
    return %c0_i32, %c0_i32_0 : i32, i32
  }
  func.func @transform_3(%arg0: i32) -> (i32, i32) {
    %c0_i32 = arith.constant 0 : i32
    %c0_i32_0 = arith.constant 0 : i32
    %c0_i32_1 = arith.constant 0 : i32
    return %c0_i32, %c0_i32_0 : i32, i32
  }
  func.func @transform_4(%arg0: i32) -> (i32, i32) {
    %c0_i32 = arith.constant 0 : i32
    %c0_i32_0 = arith.constant 0 : i32
    %c0_i32_1 = arith.constant 0 : i32
    return %c0_i32, %c0_i32_0 : i32, i32
  }
  func.func @transform_5(%arg0: i32) -> (i32, i32) {
    %c0_i32 = arith.constant 0 : i32
    %c0_i32_0 = arith.constant 0 : i32
    %c0_i32_1 = arith.constant 0 : i32
    return %c0_i32, %c0_i32_0 : i32, i32
  }
  func.func @transform_6(%arg0: i32) -> (i32, i32) {
    %c0_i32 = arith.constant 0 : i32
    %c0_i32_0 = arith.constant 0 : i32
    %c0_i32_1 = arith.constant 0 : i32
    return %c0_i32, %c0_i32_0 : i32, i32
  }
  func.func @transform_7(%arg0: i32) -> (i32, i32) {
    %c0_i32 = arith.constant 0 : i32
    %c0_i32_0 = arith.constant 0 : i32
    return %arg0, %c0_i32 : i32, i32
  }
}

</mosaic_0001>

<bundles_post_ra>
// kernel: tpu_custom_call.1
= control target key start
LH: loop header
LB: loop body
LE: loop exit
PB: predicated region body
PF: predicated region fallthrough
CT: control target
= control target key end

     0   :  { %vm39_vm0 = vcmask 261120   ;;  %vm138_vm1 = vcmask 523264   ;;  %vm314_vm2 = vcmask 64512   ;;  %s574_s1 = inlined_call_operand.vmem [shape: f32[32,64], index: 1, kind: input, shape index: {}]   ;;  %s575_s0 = inlined_call_operand.vmem [shape: f32[16,32], index: 0, kind: input, shape index: {}]   ;;  %s576_s3 = inlined_call_operand.vmem [shape: f32[64,32], index: 3, kind: input, shape index: {}]   ;;  %s577_s5 = inlined_call_operand.vmem [shape: f32[32,8], index: 5, kind: input, shape index: {}]   ;;  %s578_s2 = inlined_call_operand.vmem [shape: f32[1,64], index: 2, kind: input, shape index: {}]   ;;  %s579_s4 = inlined_call_operand.vmem [shape: f32[1,32], index: 4, kind: input, shape index: {}]   ;;  %s580_s6 = inlined_call_operand.vmem [shape: f32[1,8], index: 6, kind: input, shape index: {}]   ;;  %s581_s7 = inlined_call_operand.vmem [shape: f32[16,8], index: 7, kind: output, shape index: {}]  }
   0x1   :  { %v28_v0 = vld [vmem:[%s574_s1] sm:$0xff]  ;;  %v29_v1 = vld [vmem:[%s574_s1 + $0x8] sm:$0xff]  ;;  %v30_v2 = vld [vmem:[%s574_s1 + $0x10] sm:$0xff] }
   0x2   :  { %v415_v3 = vpack.c.bf16 %v29_v1, %v28_v0  ;;  %v31_v4 = vld [vmem:[%s574_s1 + $0x18] sm:$0xff]  ;;  %v26_v5 = vld [vmem:[%s575_s0] sm:$0xff]  ;;  %v124_v8 = vld [vmem:[%s576_s3 + $0x8] sm:$0xff] }
   0x3   :  { %v419_v6 = vpack.c.bf16 %v31_v4, %v30_v2  ;;  %382 = vmatprep.mubr.msk.f32.mxu0 %vm39_vm0, %v26_v5  ;;  %v123_v7 = vld [vmem:[%s576_s3] sm:$0xff]  ;;  %v125_v9 = vld [vmem:[%s576_s3 + $0x10] sm:$0xff]  ;;  %v126_v11 = vld [vmem:[%s576_s3 + $0x18] sm:$0xff] }
   0x4   :  { %416 = vmatprep.subr.bf16.mxu0 %v415_v3  ;;  %v423_v10 = vpack.c.bf16 %v124_v8, %v123_v7  ;;  %v427_v12 = vpack.c.bf16 %v126_v11, %v125_v9  ;;  %v127_v13 = vld [vmem:[%s576_s3 + $0x20] sm:$0xff]  ;;  %v128_v14 = vld [vmem:[%s576_s3 + $0x28] sm:$0xff]  ;;  %v129_v17 = vld [vmem:[%s576_s3 + $0x30] sm:$0xff] }
   0x5   :  { %418 = vmatpush3.bf16.msra.mxu0 %v415_v3  ;;  %v431_v15 = vpack.c.bf16 %v128_v14, %v127_v13  ;;  %v27_v16 = vld [vmem:[%s575_s0 + $0x8] sm:$0xff]  ;;  %v130_v18 = vld [vmem:[%s576_s3 + $0x38] sm:$0xff]  ;;  %v222_v20 = vld [vmem:[%s577_s5] sm:$0xff] }
   0x6   :  { %420 = vmatprep.subr.bf16.mxu0 %v419_v6  ;;  %424 = vmatprep.subr.bf16.mxu1 %v423_v10  ;;  %v435_v19 = vpack.c.bf16 %v130_v18, %v129_v17  ;;  %v223_v21 = vld [vmem:[%s577_s5 + $0x8] sm:$0xff]  ;;  %v343_v23 = vld [vmem:[%s578_s2] ss:$0 sm:$0xff]  ;;  %v224_v30 = vld [vmem:[%s577_s5 + $0x10] sm:$0xff] }
   0x7   :  { %426 = vmatpush3.bf16.msra.mxu1 %v423_v10  ;;  %v439_v22 = vpack.c.bf16 %v223_v21, %v222_v20  ;;  %v225_v31 = vld [vmem:[%s577_s5 + $0x18] sm:$0xff]  ;;  %v346_v33 = vld [vmem:[%s579_s4] ss:$0 sm:$0xff] }
   0x8   :  { %428 = vmatprep.subr.bf16.mxu1 %v427_v12  ;;  %v443_v32 = vpack.c.bf16 %v225_v31, %v224_v30  ;;  %v349_v40 = vld [vmem:[%s580_s6] ss:$0 sm:$0xff] }
   0x9   :  { %422 = vmatpush3.bf16.msra.mxu0 %v419_v6 }
   0xa   :  { %440 = vmatprep.subr.bf16.mxu0 %v439_v22 }
   0xb   :  { %430 = vmatpush3.bf16.msra.mxu1 %v427_v12 }
   0xc   :  { %383 = vmatmul.mubr.msk.f32.vlgmr.msra.gmra.mrb[0].mxu0 %vm39_vm0, %v27_v16  ;;  %432 = vmatprep.subr.bf16.mxu1 %v431_v15 }
   0xd   :  { %442 = vmatpush3.bf16.msra.mxu0 %v439_v22 }
   0xe   :  { %444 = vmatprep.subr.bf16.mxu0 %v443_v32 }
   0xf   :  { %434 = vmatpush3.bf16.msra.mxu1 %v431_v15 }
  0x10   :  { %436 = vmatprep.subr.bf16.mxu1 %v435_v19 }
  0x11   :  { %446 = vmatpush3.bf16.msra.mxu0 %v443_v32 }
  0x13   :  { %438 = vmatpush3.bf16.msra.mxu1 %v435_v19 }
  0xdf   :  { %v384_v24 = vpop.f32.mrb[0].mxu0 }
  0xe0   :  { %v118_v25 = vadd.f32 %v384_v24, %v343_v23  ;;  %v112_v26 = vpop.f32.mrb[1].mxu0 }
  0xe1   :  { %v113_v27 = vadd.f32 %v343_v23, %v112_v26 }
  0xe2   :  { %v122_v29 = vmax.f32 %v118_v25, 0.0 }
  0xe3   :  { %v121_v28 = vmax.f32 %v113_v27, 0.0 }
  0xe5   :  { %401 = vmatprep.mubr.msk.f32.mxu1 %vm138_vm1, %v121_v28 }
  0xe6   :  { %402 = vmatmul.mubr.msk.f32.vlgmr.msra.gmra.mrb[0].mxu1 %vm138_vm1, %v122_v29 }
 0x1b9   :  { %v403_v34 = vpop.f32.mrb[0].mxu1 }
 0x1ba   :  { %v217_v35 = vadd.f32 %v403_v34, %v346_v33  ;;  %v211_v36 = vpop.f32.mrb[1].mxu1 }
 0x1bb   :  { %v212_v37 = vadd.f32 %v346_v33, %v211_v36 }
 0x1bc   :  { %v221_v39 = vmax.f32 %v217_v35, 0.0 }
 0x1bd   :  { %v220_v38 = vmax.f32 %v212_v37, 0.0 }
 0x1bf   :  { %412 = vmatprep.mubr.msk.f32.mxu0 %vm39_vm0, %v220_v38 }
 0x1c0   :  { %413 = vmatmul.mubr.msk.f32.vlgmr.msra.gmra.mrb[2].mxu0 %vm39_vm0, %v221_v39 }
 0x293   :  { %v414_v41 = vpop.f32.mrb[2].mxu0 }
 0x294   :  { %v305_v42 = vpop.f32.mrb[3].mxu0  ;;  %v311_v44 = vadd.f32 %v414_v41, %v349_v40 }
 0x295   :  { %v306_v43 = vadd.f32 %v349_v40, %v305_v42 }
 0x296   :  { %v318_v46 = vsel %vm314_vm2, %v311_v44, -inf }
 0x297   :  { %v315_v45 = vsel %vm314_vm2, %v306_v43, -inf }
 0x298   :  { %316 = vmax.xlane.f32.xlu0 %v315_v45 }
 0x29c   :  { %319 = vmax.xlane.f32.xlu0 %v318_v46 }
 0x325   :  { %v317_v47 = vpop.xlane.xlu0 %316 }
 0x326   :  { %v321_v48 = vsub.f32 %v306_v43, %v317_v47 }
 0x328   :  { %v323_v49 = vmul.f32 1.442695, %v321_v48 }
 0x329   :  { %v320_v50 = vpop.xlane.xlu0 %319 }
 0x32a   :  { %447 = vpow2.f32 %v323_v49  ;;  %v322_v51 = vsub.f32 %v311_v44, %v320_v50 }
 0x32c   :  { %v325_v52 = vmul.f32 1.442695, %v322_v51 }
 0x32e   :  { %449 = vpow2.f32 %v325_v52 }
 0x334   :  { %v448_v53 = vpop.eup %447 }
 0x335   :  { %v327_v54 = vsel %vm314_vm2, %v448_v53, 0.0 }
 0x336   :  { %328 = vadd.xlane.f32.xlu1 %v327_v54 }
 0x338   :  { %v450_v55 = vpop.eup %449 }
 0x339   :  { %v330_v56 = vsel %vm314_vm2, %v450_v55, 0.0 }
 0x33a   :  { %331 = vadd.xlane.f32.xlu1 %v330_v56 }
 0x3c3   :  { %v329_v57 = vpop.xlane.xlu1 %328 }
 0x3c4   :  { %451 = vrcp.f32 %v329_v57 }
 0x3c7   :  { %v332_v58 = vpop.xlane.xlu1 %331 }
 0x3c8   :  { %453 = vrcp.f32 %v332_v58 }
 0x3ce   :  { %v452_v59 = vpop.eup %451 }
 0x3cf   :  { %v334_v60 = vmul.f32 %v452_v59, %v448_v53 }
 0x3d1   :  { %337 = vst.msk [vmem:[%s581_s7] sm:$0xff] %vm314_vm2, %v334_v60 }
 0x3d2   :  { %v454_v61 = vpop.eup %453 }
 0x3d3   :  { %v336_v62 = vmul.f32 %v454_v61, %v450_v55 }
 0x3d5   :  { %338 = vst.msk [vmem:[%s581_s7 + $0x8] sm:$0xff] %vm314_vm2, %v336_v62 }

</bundles_post_ra>
